<compile_context>
chip_gen: v5e
topology: v5e:2x2
jax: 0.10.0
libtpu: 0.0.40
codegen_flags: <defaults>
</compile_context>

<pallas_src>
import numpy as np
import jax
import jax.numpy as jnp
from jax.experimental import pallas as pl
from jax.experimental.pallas import tpu as pltpu


# ---------------------------------------------------------------------------
# JPEG constants (identical to the PyTorch reference, incl. the .T quirks).
# ---------------------------------------------------------------------------
_Y_TABLE = np.array(
    [[16, 11, 10, 16, 24, 40, 51, 61],
     [12, 12, 14, 19, 26, 58, 60, 55],
     [14, 13, 16, 24, 40, 57, 69, 56],
     [14, 17, 22, 29, 51, 87, 80, 62],
     [18, 22, 37, 56, 68, 109, 103, 77],
     [24, 35, 55, 64, 81, 104, 113, 92],
     [49, 64, 78, 87, 103, 121, 120, 101],
     [72, 92, 95, 98, 112, 100, 103, 99]], dtype=np.float64).T

_C_TABLE = np.full((8, 8), 99.0, dtype=np.float64)
_C_TABLE[:4, :4] = np.array([[17, 18, 24, 47], [18, 21, 26, 66],
                             [24, 26, 56, 99], [47, 66, 99, 99]],
                            dtype=np.float64).T


def _quality_to_factor(quality):
    if quality < 50:
        q = 5000.0 / quality
    else:
        q = 200.0 - quality * 2
    return q / 100.0


def _block_diag(block, n):
    r, c = block.shape
    out = np.zeros((n * r, n * c), dtype=np.float64)
    for i in range(n):
        out[i * r:(i + 1) * r, i * c:(i + 1) * c] = block
    return out


def _make_constants(th, tw, quality):
    """Block-diagonal DCT/IDCT matrices + folded quant planes for one tile."""
    factor = _quality_to_factor(quality)

    k = np.arange(8, dtype=np.float64)
    c8 = np.cos((2.0 * k[:, None] + 1.0) * k[None, :] * np.pi / 16.0)  # C[x,u]
    ct8 = c8.T.copy()
    alpha = np.array([1.0 / np.sqrt(2.0)] + [1.0] * 7, dtype=np.float64)
    scale8 = np.outer(alpha, alpha) * 0.25          # DCT output scale
    alpha8 = np.outer(alpha, alpha)                 # IDCT input scale

    # 2x2 average pooling / 2x nearest upsampling fused into the chroma stages.
    pool = np.zeros((8, 16), dtype=np.float64)
    pool[np.arange(8), 2 * np.arange(8)] = 0.5
    pool[np.arange(8), 2 * np.arange(8) + 1] = 0.5
    cpv = ct8 @ pool                         # (8, 16) row pool + col DCT (left)
    phd = pool.T @ c8                        # (16, 8) col pool + row DCT (right)
    uc = c8[np.repeat(np.arange(8), 2), :]   # (16, 8) col IDCT + 2x up (left)
    uct = uc.T                               # (8, 16) row IDCT + 2x up (right)

    vdy = _block_diag(ct8, th // 8)          # (th,   th)    left,  luma DCT
    hdy = _block_diag(c8, tw // 8)           # (tw,   tw)    right, luma DCT
    viy = _block_diag(c8, th // 8)           # (th,   th)    left,  luma IDCT
    hiy = _block_diag(ct8, tw // 8)          # (tw,   tw)    right, luma IDCT
    vdc = _block_diag(cpv, th // 16)         # (th/2, th)    left,  chroma DCT
    hdc = _block_diag(phd, tw // 16)         # (tw,   tw/2)  right, chroma DCT
    vic = _block_diag(uc, th // 16)          # (th,   th/2)  left,  chroma IDCT
    hic = _block_diag(uct, tw // 16)         # (tw/2, tw)    right, chroma IDCT

    ty = _Y_TABLE * factor
    tc = _C_TABLE * factor
    # q   = (C^T X C) * (scale / qtab)                      -> qdiv
    # rec = C (diff_round(q) * (qtab * alpha * 0.25)) C^T   -> qmul
    qdy = np.tile(scale8 / ty, (th // 8, tw // 8))           # (th,   tw)
    qmy = np.tile(ty * alpha8 * 0.25, (th // 8, tw // 8))    # (th,   tw)
    qdc = np.tile(scale8 / tc, (th // 16, tw // 16))         # (th/2, tw/2)
    qmc = np.tile(tc * alpha8 * 0.25, (th // 16, tw // 16))  # (th/2, tw/2)

    consts = [vdy, hdy, viy, hiy, vdc, hdc, vic, hic, qdy, qmy, qdc, qmc]
    return [jnp.asarray(c, dtype=jnp.float32) for c in consts]


# ---------------------------------------------------------------------------
# Pallas kernel: one grid step == one (image, row-strip, col-tile) tile.
# ---------------------------------------------------------------------------
def _diffjpeg_kernel(x_ref,
                     vdy_ref, hdy_ref, viy_ref, hiy_ref,
                     vdc_ref, hdc_ref, vic_ref, hic_ref,
                     qdy_ref, qmy_ref, qdc_ref, qmc_ref,
                     out_ref):
    f32 = jnp.float32

    def mm(a, b):
        return jnp.dot(a, b, preferred_element_type=jnp.float32)

    # Load the small constants once (re-used by both chroma channels).
    vdy = vdy_ref[...]; hdy = hdy_ref[...]
    viy = viy_ref[...]; hiy = hiy_ref[...]
    vdc = vdc_ref[...]; hdc = hdc_ref[...]
    vic = vic_ref[...]; hic = hic_ref[...]
    qdy = qdy_ref[...]; qmy = qmy_ref[...]
    qdc = qdc_ref[...]; qmc = qmc_ref[...]

    # rgb_to_ycbcr_jpeg on the 255-scaled input; chroma kept centered (-128,
    # the +/-128 of the chroma codec cancels against ycbcr_to_rgb_jpeg).
    r = x_ref[0, 0].astype(f32) * 255.0
    g = x_ref[0, 1].astype(f32) * 255.0
    b = x_ref[0, 2].astype(f32) * 255.0
    y = 0.299 * r + 0.587 * g + 0.114 * b - 128.0
    cb = -0.168736 * r - 0.331264 * g + 0.5 * b
    cr = 0.5 * r - 0.418688 * g - 0.081312 * b

    def codec(plane, vd, hd, vi, hi, qdiv, qmul):
        # Forward per-8x8-block 2-D DCT (chroma: 2x2 pooling fused in vd/hd).
        coef = mm(mm(vd, plane), hd) * qdiv
        rq = jnp.round(coef)
        d = coef - rq
        coef = (rq + d * d * d) * qmul          # diff_round + dequant (+alpha)
        # Inverse 2-D DCT (chroma: 2x nearest upsampling fused in vi/hi).
        return mm(mm(vi, coef), hi)             # 0.25 folded into qmul

    y_rec = codec(y, vdy, hdy, viy, hiy, qdy, qmy) + 128.0
    cb_rec = codec(cb, vdc, hdc, vic, hic, qdc, qmc)
    cr_rec = codec(cr, vdc, hdc, vic, hic, qdc, qmc)

    # ycbcr_to_rgb_jpeg + clamp to [0, 255] + /255.
    rr = y_rec + 1.402 * cr_rec
    gg = y_rec - 0.344136 * cb_rec - 0.714136 * cr_rec
    bb = y_rec + 1.772 * cb_rec

    inv255 = 1.0 / 255.0
    out_ref[0, 0] = (jnp.clip(rr, 0.0, 255.0) * inv255).astype(out_ref.dtype)
    out_ref[0, 1] = (jnp.clip(gg, 0.0, 255.0) * inv255).astype(out_ref.dtype)
    out_ref[0, 2] = (jnp.clip(bb, 0.0, 255.0) * inv255).astype(out_ref.dtype)


def _pick_tile(n):
    """Tile extent: lane/strip-dense 128 when possible, else the full extent."""
    return 128 if n >= 128 else n


def diff_jpeg(x, height, width, quality=80):
    """Pallas implementation of DiffJPEG(height, width, True, quality)(x)."""
    B, C, H, W = x.shape
    assert C == 3 and H == height and W == width
    assert H % 16 == 0 and W % 16 == 0, "H, W must be multiples of 16"

    TH = _pick_tile(H)
    TW = _pick_tile(W)
    Hp = -(-H // TH) * TH
    Wp = -(-W // TW) * TW

    xin = x
    if (Hp, Wp) != (H, W):
        # Zero-pad up to whole tiles; padded 8x8 blocks never mix with real
        # ones (H, W multiples of 16) and are sliced off below.
        xin = jnp.pad(x, ((0, 0), (0, 0), (0, Hp - H), (0, Wp - W)))

    consts = _make_constants(TH, TW, quality)

    n_strips = Hp // TH
    n_cols = Wp // TW
    grid = (B * n_strips, n_cols)   # first (split) axis >= 2 whenever possible

    if n_strips == 1:
        xy_map = lambda p, cj: (p, 0, 0, cj)
    else:
        xy_map = lambda p, cj: (p // n_strips, 0, p % n_strips, cj)

    x_spec = pl.BlockSpec((1, 3, TH, TW), xy_map)
    out_spec = pl.BlockSpec((1, 3, TH, TW), xy_map)
    const_specs = [pl.BlockSpec(c.shape, lambda p, cj: (0, 0)) for c in consts]

    itemsize = x.dtype.itemsize
    const_bytes = int(sum(int(c.size) * 4 for c in consts))
    io_block_bytes = 3 * TH * TW * itemsize
    # double-buffered in + out blocks, resident constants, ~22 live f32 planes
    need = 4 * io_block_bytes + 2 * const_bytes + 22 * TH * TW * 4
    try:
        vmem_cap = int(pltpu.get_tpu_info().vmem_capacity_bytes)
    except Exception:
        vmem_cap = 64 << 20
    vmem_limit = int(min(max(2 * need, 32 << 20), 40 << 20, vmem_cap // 2))

    # 4 luma + 8 chroma block-diagonal passes -> 3.5*(TH+TW) MACs / pixel.
    macs_per_px = 3.5 * (TH + TW)
    cost = pl.CostEstimate(
        flops=int(B * Hp * Wp * (2.0 * macs_per_px + 80.0)),
        transcendentals=0,
        bytes_accessed=int(B * 3 * Hp * Wp * 2 * itemsize + const_bytes),
    )

    fn = pl.pallas_call(
        _diffjpeg_kernel,
        out_shape=jax.ShapeDtypeStruct((B, 3, Hp, Wp), x.dtype),
        grid_spec=pltpu.PrefetchScalarGridSpec(
            num_scalar_prefetch=0,
            grid=grid,
            in_specs=[x_spec] + const_specs,
            out_specs=out_spec,
        ),
        compiler_params=pltpu.CompilerParams(
            dimension_semantics=("parallel", "parallel"),
            vmem_limit_bytes=vmem_limit,
        ),
        cost_estimate=cost,
    )
    out = fn(xin, *consts)
    if (Hp, Wp) != (H, W):
        out = out[:, :, :H, :W]
    return out


if __name__ == "__main__":
    B, C, H, W = 2, 3, 16, 16
    key = jax.random.PRNGKey(0)
    x = jax.random.uniform(key, (B, C, H, W), dtype=jnp.float32)

    out = diff_jpeg(x, height=H, width=W, quality=80)
    out = jax.block_until_ready(out)

    assert out.shape == (B, C, H, W)
    assert bool(jnp.all(jnp.isfinite(out)))
    assert bool(jnp.all(out >= 0.0)) and bool(jnp.all(out <= 1.0))
    print("KERNEL_OK")
</pallas_src>

<mosaic_0001>
module attributes {stable_mosaic.version = 11 : i64} {
  func.func @_diffjpeg_kernel(%arg0: i32, %arg1: i32, %arg2: memref<1x3x16x16xf32, #tpu.memory_space<vmem>>, %arg3: memref<16x16xf32, #tpu.memory_space<vmem>>, %arg4: memref<16x16xf32, #tpu.memory_space<vmem>>, %arg5: memref<16x16xf32, #tpu.memory_space<vmem>>, %arg6: memref<16x16xf32, #tpu.memory_space<vmem>>, %arg7: memref<8x16xf32, #tpu.memory_space<vmem>>, %arg8: memref<16x8xf32, #tpu.memory_space<vmem>>, %arg9: memref<16x8xf32, #tpu.memory_space<vmem>>, %arg10: memref<8x16xf32, #tpu.memory_space<vmem>>, %arg11: memref<16x16xf32, #tpu.memory_space<vmem>>, %arg12: memref<16x16xf32, #tpu.memory_space<vmem>>, %arg13: memref<8x8xf32, #tpu.memory_space<vmem>>, %arg14: memref<8x8xf32, #tpu.memory_space<vmem>>, %arg15: memref<1x3x16x16xf32, #tpu.memory_space<vmem>>) attributes {dimension_semantics = [#tpu.dimension_semantics<parallel>, #tpu.dimension_semantics<parallel>], iteration_bounds = array<i64: 2, 1>, scalar_prefetch = 0 : i64, scratch_operands = 0 : i64, tpu.core_type = #tpu.core_type<tc>, window_params = [{transform_indices = @transform_0, window_bounds = array<i64: 1, 3, 16, 16>}, {pipeline_mode = #tpu.pipeline_mode<synchronous>, transform_indices = @transform_1, window_bounds = array<i64: 16, 16>}, {pipeline_mode = #tpu.pipeline_mode<synchronous>, transform_indices = @transform_2, window_bounds = array<i64: 16, 16>}, {pipeline_mode = #tpu.pipeline_mode<synchronous>, transform_indices = @transform_3, window_bounds = array<i64: 16, 16>}, {pipeline_mode = #tpu.pipeline_mode<synchronous>, transform_indices = @transform_4, window_bounds = array<i64: 16, 16>}, {pipeline_mode = #tpu.pipeline_mode<synchronous>, transform_indices = @transform_5, window_bounds = array<i64: 8, 16>}, {pipeline_mode = #tpu.pipeline_mode<synchronous>, transform_indices = @transform_6, window_bounds = array<i64: 16, 8>}, {pipeline_mode = #tpu.pipeline_mode<synchronous>, transform_indices = @transform_7, window_bounds = array<i64: 16, 8>}, {pipeline_mode = #tpu.pipeline_mode<synchronous>, transform_indices = @transform_8, window_bounds = array<i64: 8, 16>}, {pipeline_mode = #tpu.pipeline_mode<synchronous>, transform_indices = @transform_9, window_bounds = array<i64: 16, 16>}, {pipeline_mode = #tpu.pipeline_mode<synchronous>, transform_indices = @transform_10, window_bounds = array<i64: 16, 16>}, {pipeline_mode = #tpu.pipeline_mode<synchronous>, transform_indices = @transform_11, window_bounds = array<i64: 8, 8>}, {pipeline_mode = #tpu.pipeline_mode<synchronous>, transform_indices = @transform_12, window_bounds = array<i64: 8, 8>}, {transform_indices = @transform_13, window_bounds = array<i64: 1, 3, 16, 16>}]} {
    %c0 = arith.constant 0 : index
    %c0_0 = arith.constant 0 : index
    %0 = vector.load %arg3[%c0, %c0_0] : memref<16x16xf32, #tpu.memory_space<vmem>>, vector<16x16xf32>
    %c0_1 = arith.constant 0 : index
    %c0_2 = arith.constant 0 : index
    %1 = vector.load %arg4[%c0_1, %c0_2] : memref<16x16xf32, #tpu.memory_space<vmem>>, vector<16x16xf32>
    %c0_3 = arith.constant 0 : index
    %c0_4 = arith.constant 0 : index
    %2 = vector.load %arg5[%c0_3, %c0_4] : memref<16x16xf32, #tpu.memory_space<vmem>>, vector<16x16xf32>
    %c0_5 = arith.constant 0 : index
    %c0_6 = arith.constant 0 : index
    %3 = vector.load %arg6[%c0_5, %c0_6] : memref<16x16xf32, #tpu.memory_space<vmem>>, vector<16x16xf32>
    %c0_7 = arith.constant 0 : index
    %c0_8 = arith.constant 0 : index
    %4 = vector.load %arg7[%c0_7, %c0_8] : memref<8x16xf32, #tpu.memory_space<vmem>>, vector<8x16xf32>
    %c0_9 = arith.constant 0 : index
    %c0_10 = arith.constant 0 : index
    %5 = vector.load %arg8[%c0_9, %c0_10] : memref<16x8xf32, #tpu.memory_space<vmem>>, vector<16x8xf32>
    %c0_11 = arith.constant 0 : index
    %c0_12 = arith.constant 0 : index
    %6 = vector.load %arg9[%c0_11, %c0_12] : memref<16x8xf32, #tpu.memory_space<vmem>>, vector<16x8xf32>
    %c0_13 = arith.constant 0 : index
    %c0_14 = arith.constant 0 : index
    %7 = vector.load %arg10[%c0_13, %c0_14] : memref<8x16xf32, #tpu.memory_space<vmem>>, vector<8x16xf32>
    %c0_15 = arith.constant 0 : index
    %c0_16 = arith.constant 0 : index
    %8 = vector.load %arg11[%c0_15, %c0_16] : memref<16x16xf32, #tpu.memory_space<vmem>>, vector<16x16xf32>
    %c0_17 = arith.constant 0 : index
    %c0_18 = arith.constant 0 : index
    %9 = vector.load %arg12[%c0_17, %c0_18] : memref<16x16xf32, #tpu.memory_space<vmem>>, vector<16x16xf32>
    %c0_19 = arith.constant 0 : index
    %c0_20 = arith.constant 0 : index
    %10 = vector.load %arg13[%c0_19, %c0_20] : memref<8x8xf32, #tpu.memory_space<vmem>>, vector<8x8xf32>
    %c0_21 = arith.constant 0 : index
    %c0_22 = arith.constant 0 : index
    %11 = vector.load %arg14[%c0_21, %c0_22] : memref<8x8xf32, #tpu.memory_space<vmem>>, vector<8x8xf32>
    %c0_23 = arith.constant 0 : index
    %c0_24 = arith.constant 0 : index
    %c0_25 = arith.constant 0 : index
    %c0_26 = arith.constant 0 : index
    %12 = vector.load %arg2[%c0_23, %c0_24, %c0_25, %c0_26] : memref<1x3x16x16xf32, #tpu.memory_space<vmem>>, vector<1x1x16x16xf32>
    %13 = vector.shape_cast %12 : vector<1x1x16x16xf32> to vector<16x16xf32>
    %cst = arith.constant 2.550000e+02 : f32
    %14 = vector.broadcast %cst : f32 to vector<16x16xf32>
    %15 = arith.mulf %13, %14 : vector<16x16xf32>
    %c0_27 = arith.constant 0 : index
    %c1 = arith.constant 1 : index
    %c0_28 = arith.constant 0 : index
    %c0_29 = arith.constant 0 : index
    %16 = vector.load %arg2[%c0_27, %c1, %c0_28, %c0_29] : memref<1x3x16x16xf32, #tpu.memory_space<vmem>>, vector<1x1x16x16xf32>
    %17 = vector.shape_cast %16 : vector<1x1x16x16xf32> to vector<16x16xf32>
    %cst_30 = arith.constant 2.550000e+02 : f32
    %18 = vector.broadcast %cst_30 : f32 to vector<16x16xf32>
    %19 = arith.mulf %17, %18 : vector<16x16xf32>
    %c0_31 = arith.constant 0 : index
    %c2 = arith.constant 2 : index
    %c0_32 = arith.constant 0 : index
    %c0_33 = arith.constant 0 : index
    %20 = vector.load %arg2[%c0_31, %c2, %c0_32, %c0_33] : memref<1x3x16x16xf32, #tpu.memory_space<vmem>>, vector<1x1x16x16xf32>
    %21 = vector.shape_cast %20 : vector<1x1x16x16xf32> to vector<16x16xf32>
    %cst_34 = arith.constant 2.550000e+02 : f32
    %22 = vector.broadcast %cst_34 : f32 to vector<16x16xf32>
    %23 = arith.mulf %21, %22 : vector<16x16xf32>
    %cst_35 = arith.constant 2.990000e-01 : f32
    %24 = vector.broadcast %cst_35 : f32 to vector<16x16xf32>
    %25 = arith.mulf %24, %15 : vector<16x16xf32>
    %cst_36 = arith.constant 5.870000e-01 : f32
    %26 = vector.broadcast %cst_36 : f32 to vector<16x16xf32>
    %27 = arith.mulf %26, %19 : vector<16x16xf32>
    %28 = arith.addf %25, %27 : vector<16x16xf32>
    %cst_37 = arith.constant 1.140000e-01 : f32
    %29 = vector.broadcast %cst_37 : f32 to vector<16x16xf32>
    %30 = arith.mulf %29, %23 : vector<16x16xf32>
    %31 = arith.addf %28, %30 : vector<16x16xf32>
    %cst_38 = arith.constant 1.280000e+02 : f32
    %32 = vector.broadcast %cst_38 : f32 to vector<16x16xf32>
    %33 = arith.subf %31, %32 : vector<16x16xf32>
    %cst_39 = arith.constant -1.687360e-01 : f32
    %34 = vector.broadcast %cst_39 : f32 to vector<16x16xf32>
    %35 = arith.mulf %34, %15 : vector<16x16xf32>
    %cst_40 = arith.constant 3.312640e-01 : f32
    %36 = vector.broadcast %cst_40 : f32 to vector<16x16xf32>
    %37 = arith.mulf %36, %19 : vector<16x16xf32>
    %38 = arith.subf %35, %37 : vector<16x16xf32>
    %cst_41 = arith.constant 5.000000e-01 : f32
    %39 = vector.broadcast %cst_41 : f32 to vector<16x16xf32>
    %40 = arith.mulf %39, %23 : vector<16x16xf32>
    %41 = arith.addf %38, %40 : vector<16x16xf32>
    %cst_42 = arith.constant 5.000000e-01 : f32
    %42 = vector.broadcast %cst_42 : f32 to vector<16x16xf32>
    %43 = arith.mulf %42, %15 : vector<16x16xf32>
    %cst_43 = arith.constant 4.186880e-01 : f32
    %44 = vector.broadcast %cst_43 : f32 to vector<16x16xf32>
    %45 = arith.mulf %44, %19 : vector<16x16xf32>
    %46 = arith.subf %43, %45 : vector<16x16xf32>
    %cst_44 = arith.constant 8.131200e-02 : f32
    %47 = vector.broadcast %cst_44 : f32 to vector<16x16xf32>
    %48 = arith.mulf %47, %23 : vector<16x16xf32>
    %49 = arith.subf %46, %48 : vector<16x16xf32>
    %cst_45 = arith.constant dense<0.000000e+00> : vector<16x16xf32>
    %50 = tpu.matmul %0, %33, %cst_45 {dimension_numbers = #tpu.dot_dimension_numbers<[1], [0], [0], [1], [0, 0, 1, 1], [], []>} : vector<16x16xf32>, vector<16x16xf32>, vector<16x16xf32> -> vector<16x16xf32>
    %cst_46 = arith.constant dense<0.000000e+00> : vector<16x16xf32>
    %51 = tpu.matmul %50, %1, %cst_46 {dimension_numbers = #tpu.dot_dimension_numbers<[1], [0], [0], [1], [0, 0, 1, 1], [], []>} : vector<16x16xf32>, vector<16x16xf32>, vector<16x16xf32> -> vector<16x16xf32>
    %52 = arith.mulf %51, %8 : vector<16x16xf32>
    %53 = math.roundeven %52 : vector<16x16xf32>
    %54 = arith.subf %52, %53 : vector<16x16xf32>
    %55 = arith.mulf %54, %54 : vector<16x16xf32>
    %56 = arith.mulf %55, %54 : vector<16x16xf32>
    %57 = arith.addf %53, %56 : vector<16x16xf32>
    %58 = arith.mulf %57, %9 : vector<16x16xf32>
    %cst_47 = arith.constant dense<0.000000e+00> : vector<16x16xf32>
    %59 = tpu.matmul %2, %58, %cst_47 {dimension_numbers = #tpu.dot_dimension_numbers<[1], [0], [0], [1], [0, 0, 1, 1], [], []>} : vector<16x16xf32>, vector<16x16xf32>, vector<16x16xf32> -> vector<16x16xf32>
    %cst_48 = arith.constant dense<0.000000e+00> : vector<16x16xf32>
    %60 = tpu.matmul %59, %3, %cst_48 {dimension_numbers = #tpu.dot_dimension_numbers<[1], [0], [0], [1], [0, 0, 1, 1], [], []>} : vector<16x16xf32>, vector<16x16xf32>, vector<16x16xf32> -> vector<16x16xf32>
    %cst_49 = arith.constant 1.280000e+02 : f32
    %61 = vector.broadcast %cst_49 : f32 to vector<16x16xf32>
    %62 = arith.addf %60, %61 : vector<16x16xf32>
    %cst_50 = arith.constant dense<0.000000e+00> : vector<8x16xf32>
    %63 = tpu.matmul %4, %41, %cst_50 {dimension_numbers = #tpu.dot_dimension_numbers<[1], [0], [0], [1], [0, 0, 1, 1], [], []>} : vector<8x16xf32>, vector<16x16xf32>, vector<8x16xf32> -> vector<8x16xf32>
    %cst_51 = arith.constant dense<0.000000e+00> : vector<8x8xf32>
    %64 = tpu.matmul %63, %5, %cst_51 {dimension_numbers = #tpu.dot_dimension_numbers<[1], [0], [0], [1], [0, 0, 1, 1], [], []>} : vector<8x16xf32>, vector<16x8xf32>, vector<8x8xf32> -> vector<8x8xf32>
    %65 = arith.mulf %64, %10 : vector<8x8xf32>
    %66 = math.roundeven %65 : vector<8x8xf32>
    %67 = arith.subf %65, %66 : vector<8x8xf32>
    %68 = arith.mulf %67, %67 : vector<8x8xf32>
    %69 = arith.mulf %68, %67 : vector<8x8xf32>
    %70 = arith.addf %66, %69 : vector<8x8xf32>
    %71 = arith.mulf %70, %11 : vector<8x8xf32>
    %cst_52 = arith.constant dense<0.000000e+00> : vector<16x8xf32>
    %72 = tpu.matmul %6, %71, %cst_52 {dimension_numbers = #tpu.dot_dimension_numbers<[1], [0], [0], [1], [0, 0, 1, 1], [], []>} : vector<16x8xf32>, vector<8x8xf32>, vector<16x8xf32> -> vector<16x8xf32>
    %cst_53 = arith.constant dense<0.000000e+00> : vector<16x16xf32>
    %73 = tpu.matmul %72, %7, %cst_53 {dimension_numbers = #tpu.dot_dimension_numbers<[1], [0], [0], [1], [0, 0, 1, 1], [], []>} : vector<16x8xf32>, vector<8x16xf32>, vector<16x16xf32> -> vector<16x16xf32>
    %cst_54 = arith.constant dense<0.000000e+00> : vector<8x16xf32>
    %74 = tpu.matmul %4, %49, %cst_54 {dimension_numbers = #tpu.dot_dimension_numbers<[1], [0], [0], [1], [0, 0, 1, 1], [], []>} : vector<8x16xf32>, vector<16x16xf32>, vector<8x16xf32> -> vector<8x16xf32>
    %cst_55 = arith.constant dense<0.000000e+00> : vector<8x8xf32>
    %75 = tpu.matmul %74, %5, %cst_55 {dimension_numbers = #tpu.dot_dimension_numbers<[1], [0], [0], [1], [0, 0, 1, 1], [], []>} : vector<8x16xf32>, vector<16x8xf32>, vector<8x8xf32> -> vector<8x8xf32>
    %76 = arith.mulf %75, %10 : vector<8x8xf32>
    %77 = math.roundeven %76 : vector<8x8xf32>
    %78 = arith.subf %76, %77 : vector<8x8xf32>
    %79 = arith.mulf %78, %78 : vector<8x8xf32>
    %80 = arith.mulf %79, %78 : vector<8x8xf32>
    %81 = arith.addf %77, %80 : vector<8x8xf32>
    %82 = arith.mulf %81, %11 : vector<8x8xf32>
    %cst_56 = arith.constant dense<0.000000e+00> : vector<16x8xf32>
    %83 = tpu.matmul %6, %82, %cst_56 {dimension_numbers = #tpu.dot_dimension_numbers<[1], [0], [0], [1], [0, 0, 1, 1], [], []>} : vector<16x8xf32>, vector<8x8xf32>, vector<16x8xf32> -> vector<16x8xf32>
    %cst_57 = arith.constant dense<0.000000e+00> : vector<16x16xf32>
    %84 = tpu.matmul %83, %7, %cst_57 {dimension_numbers = #tpu.dot_dimension_numbers<[1], [0], [0], [1], [0, 0, 1, 1], [], []>} : vector<16x8xf32>, vector<8x16xf32>, vector<16x16xf32> -> vector<16x16xf32>
    %cst_58 = arith.constant 1.402000e+00 : f32
    %85 = vector.broadcast %cst_58 : f32 to vector<16x16xf32>
    %86 = arith.mulf %85, %84 : vector<16x16xf32>
    %87 = arith.addf %62, %86 : vector<16x16xf32>
    %cst_59 = arith.constant 3.441360e-01 : f32
    %88 = vector.broadcast %cst_59 : f32 to vector<16x16xf32>
    %89 = arith.mulf %88, %73 : vector<16x16xf32>
    %90 = arith.subf %62, %89 : vector<16x16xf32>
    %cst_60 = arith.constant 7.141360e-01 : f32
    %91 = vector.broadcast %cst_60 : f32 to vector<16x16xf32>
    %92 = arith.mulf %91, %84 : vector<16x16xf32>
    %93 = arith.subf %90, %92 : vector<16x16xf32>
    %cst_61 = arith.constant 1.772000e+00 : f32
    %94 = vector.broadcast %cst_61 : f32 to vector<16x16xf32>
    %95 = arith.mulf %94, %73 : vector<16x16xf32>
    %96 = arith.addf %62, %95 : vector<16x16xf32>
    %cst_62 = arith.constant 0.000000e+00 : f32
    %cst_63 = arith.constant 2.550000e+02 : f32
    %97 = vector.broadcast %cst_62 : f32 to vector<16x16xf32>
    %98 = arith.maximumf %97, %87 : vector<16x16xf32>
    %99 = vector.broadcast %cst_63 : f32 to vector<16x16xf32>
    %100 = arith.minimumf %99, %98 : vector<16x16xf32>
    %cst_64 = arith.constant 0.00392156886 : f32
    %101 = vector.broadcast %cst_64 : f32 to vector<16x16xf32>
    %102 = arith.mulf %100, %101 : vector<16x16xf32>
    %c0_65 = arith.constant 0 : index
    %c0_66 = arith.constant 0 : index
    %c0_67 = arith.constant 0 : index
    %c0_68 = arith.constant 0 : index
    %103 = vector.load %arg15[%c0_65, %c0_66, %c0_67, %c0_68] : memref<1x3x16x16xf32, #tpu.memory_space<vmem>>, vector<1x1x16x16xf32>
    %104 = vector.shape_cast %103 : vector<1x1x16x16xf32> to vector<16x16xf32>
    %105 = vector.shape_cast %102 : vector<16x16xf32> to vector<1x1x16x16xf32>
    tpu.vector_store %arg15[%c0_65, %c0_66, %c0_67, %c0_68], %105 {strides = array<i32>} : memref<1x3x16x16xf32, #tpu.memory_space<vmem>>, vector<1x1x16x16xf32>,
    %cst_69 = arith.constant 0.000000e+00 : f32
    %cst_70 = arith.constant 2.550000e+02 : f32
    %106 = vector.broadcast %cst_69 : f32 to vector<16x16xf32>
    %107 = arith.maximumf %106, %93 : vector<16x16xf32>
    %108 = vector.broadcast %cst_70 : f32 to vector<16x16xf32>
    %109 = arith.minimumf %108, %107 : vector<16x16xf32>
    %cst_71 = arith.constant 0.00392156886 : f32
    %110 = vector.broadcast %cst_71 : f32 to vector<16x16xf32>
    %111 = arith.mulf %109, %110 : vector<16x16xf32>
    %c0_72 = arith.constant 0 : index
    %c1_73 = arith.constant 1 : index
    %c0_74 = arith.constant 0 : index
    %c0_75 = arith.constant 0 : index
    %112 = vector.load %arg15[%c0_72, %c1_73, %c0_74, %c0_75] : memref<1x3x16x16xf32, #tpu.memory_space<vmem>>, vector<1x1x16x16xf32>
    %113 = vector.shape_cast %112 : vector<1x1x16x16xf32> to vector<16x16xf32>
    %114 = vector.shape_cast %111 : vector<16x16xf32> to vector<1x1x16x16xf32>
    tpu.vector_store %arg15[%c0_72, %c1_73, %c0_74, %c0_75], %114 {strides = array<i32>} : memref<1x3x16x16xf32, #tpu.memory_space<vmem>>, vector<1x1x16x16xf32>,
    %cst_76 = arith.constant 0.000000e+00 : f32
    %cst_77 = arith.constant 2.550000e+02 : f32
    %115 = vector.broadcast %cst_76 : f32 to vector<16x16xf32>
    %116 = arith.maximumf %115, %96 : vector<16x16xf32>
    %117 = vector.broadcast %cst_77 : f32 to vector<16x16xf32>
    %118 = arith.minimumf %117, %116 : vector<16x16xf32>
    %cst_78 = arith.constant 0.00392156886 : f32
    %119 = vector.broadcast %cst_78 : f32 to vector<16x16xf32>
    %120 = arith.mulf %118, %119 : vector<16x16xf32>
    %c0_79 = arith.constant 0 : index
    %c2_80 = arith.constant 2 : index
    %c0_81 = arith.constant 0 : index
    %c0_82 = arith.constant 0 : index
    %121 = vector.load %arg15[%c0_79, %c2_80, %c0_81, %c0_82] : memref<1x3x16x16xf32, #tpu.memory_space<vmem>>, vector<1x1x16x16xf32>
    %122 = vector.shape_cast %121 : vector<1x1x16x16xf32> to vector<16x16xf32>
    %123 = vector.shape_cast %120 : vector<16x16xf32> to vector<1x1x16x16xf32>
    tpu.vector_store %arg15[%c0_79, %c2_80, %c0_81, %c0_82], %123 {strides = array<i32>} : memref<1x3x16x16xf32, #tpu.memory_space<vmem>>, vector<1x1x16x16xf32>,
    return
  }
  func.func @transform_0(%arg0: i32, %arg1: i32) -> (i32, i32, i32, i32) {
    %c0_i32 = arith.constant 0 : i32
    %c0_i32_0 = arith.constant 0 : i32
    %c0_i32_1 = arith.constant 0 : i32
    return %arg0, %c0_i32, %c0_i32_0, %arg1 : i32, i32, i32, i32
  }
  func.func @transform_1(%arg0: i32, %arg1: i32) -> (i32, i32) {
    %c0_i32 = arith.constant 0 : i32
    %c0_i32_0 = arith.constant 0 : i32
    %c0_i32_1 = arith.constant 0 : i32
    return %c0_i32, %c0_i32_0 : i32, i32
  }
  func.func @transform_2(%arg0: i32, %arg1: i32) -> (i32, i32) {
    %c0_i32 = arith.constant 0 : i32
    %c0_i32_0 = arith.constant 0 : i32
    %c0_i32_1 = arith.constant 0 : i32
    return %c0_i32, %c0_i32_0 : i32, i32
  }
  func.func @transform_3(%arg0: i32, %arg1: i32) -> (i32, i32) {
    %c0_i32 = arith.constant 0 : i32
    %c0_i32_0 = arith.constant 0 : i32
    %c0_i32_1 = arith.constant 0 : i32
    return %c0_i32, %c0_i32_0 : i32, i32
  }
  func.func @transform_4(%arg0: i32, %arg1: i32) -> (i32, i32) {
    %c0_i32 = arith.constant 0 : i32
    %c0_i32_0 = arith.constant 0 : i32
    %c0_i32_1 = arith.constant 0 : i32
    return %c0_i32, %c0_i32_0 : i32, i32
  }
  func.func @transform_5(%arg0: i32, %arg1: i32) -> (i32, i32) {
    %c0_i32 = arith.constant 0 : i32
    %c0_i32_0 = arith.constant 0 : i32
    %c0_i32_1 = arith.constant 0 : i32
    return %c0_i32, %c0_i32_0 : i32, i32
  }
  func.func @transform_6(%arg0: i32, %arg1: i32) -> (i32, i32) {
    %c0_i32 = arith.constant 0 : i32
    %c0_i32_0 = arith.constant 0 : i32
    %c0_i32_1 = arith.constant 0 : i32
    return %c0_i32, %c0_i32_0 : i32, i32
  }
  func.func @transform_7(%arg0: i32, %arg1: i32) -> (i32, i32) {
    %c0_i32 = arith.constant 0 : i32
    %c0_i32_0 = arith.constant 0 : i32
    %c0_i32_1 = arith.constant 0 : i32
    return %c0_i32, %c0_i32_0 : i32, i32
  }
  func.func @transform_8(%arg0: i32, %arg1: i32) -> (i32, i32) {
    %c0_i32 = arith.constant 0 : i32
    %c0_i32_0 = arith.constant 0 : i32
    %c0_i32_1 = arith.constant 0 : i32
    return %c0_i32, %c0_i32_0 : i32, i32
  }
  func.func @transform_9(%arg0: i32, %arg1: i32) -> (i32, i32) {
    %c0_i32 = arith.constant 0 : i32
    %c0_i32_0 = arith.constant 0 : i32
    %c0_i32_1 = arith.constant 0 : i32
    return %c0_i32, %c0_i32_0 : i32, i32
  }
  func.func @transform_10(%arg0: i32, %arg1: i32) -> (i32, i32) {
    %c0_i32 = arith.constant 0 : i32
    %c0_i32_0 = arith.constant 0 : i32
    %c0_i32_1 = arith.constant 0 : i32
    return %c0_i32, %c0_i32_0 : i32, i32
  }
  func.func @transform_11(%arg0: i32, %arg1: i32) -> (i32, i32) {
    %c0_i32 = arith.constant 0 : i32
    %c0_i32_0 = arith.constant 0 : i32
    %c0_i32_1 = arith.constant 0 : i32
    return %c0_i32, %c0_i32_0 : i32, i32
  }
  func.func @transform_12(%arg0: i32, %arg1: i32) -> (i32, i32) {
    %c0_i32 = arith.constant 0 : i32
    %c0_i32_0 = arith.constant 0 : i32
    %c0_i32_1 = arith.constant 0 : i32
    return %c0_i32, %c0_i32_0 : i32, i32
  }
  func.func @transform_13(%arg0: i32, %arg1: i32) -> (i32, i32, i32, i32) {
    %c0_i32 = arith.constant 0 : i32
    %c0_i32_0 = arith.constant 0 : i32
    %c0_i32_1 = arith.constant 0 : i32
    return %arg0, %c0_i32, %c0_i32_0, %arg1 : i32, i32, i32, i32
  }
}

</mosaic_0001>

<bundles_post_ra>
// kernel: tpu_custom_call.1
= control target key start
LH: loop header
LB: loop body
LE: loop exit
PB: predicated region body
PF: predicated region fallthrough
CT: control target
= control target key end

     0   :  { %s2057_s0 = inlined_call_operand.hbm [shape: f32[2,3,16,16], index: 0, kind: input, shape index: {}]   ;;  %s2058_s1 = inlined_call_operand.vmem [shape: f32[16,16], index: 1, kind: input, shape index: {}]   ;;  %s2059_s2 = inlined_call_operand.vmem [shape: f32[16,16], index: 2, kind: input, shape index: {}]   ;;  %s2060_s3 = inlined_call_operand.vmem [shape: f32[16,16], index: 3, kind: input, shape index: {}]   ;;  %s2061_s4 = inlined_call_operand.hbm [shape: f32[16,16], index: 4, kind: input, shape index: {}]   ;;  %s2062_s5 = inlined_call_operand.hbm [shape: f32[8,16], index: 5, kind: input, shape index: {}]   ;;  %s2063_s6 = inlined_call_operand.vmem [shape: f32[16,8], index: 6, kind: input, shape index: {}]   ;;  %s2064_s7 = inlined_call_operand.vmem [shape: f32[16,8], index: 7, kind: input, shape index: {}]   ;;  %s2065_s8 = inlined_call_operand.hbm [shape: f32[8,16], index: 8, kind: input, shape index: {}]   ;;  %s2066_s9 = inlined_call_operand.hbm [shape: f32[16,16], index: 9, kind: input, shape index: {}]   ;;  %s2067_s10 = inlined_call_operand.hbm [shape: f32[16,16], index: 10, kind: input, shape index: {}]   ;;  %s2068_s11 = inlined_call_operand.vmem [shape: f32[8,8], index: 11, kind: input, shape index: {}]   ;;  %s2069_s12 = inlined_call_operand.hbm [shape: f32[8,8], index: 12, kind: input, shape index: {}]   ;;  %s2070_s13 = inlined_call_operand.hbm [shape: f32[2,3,16,16], index: 13, kind: output, shape index: {}]  }
   0x1   :  { %2077 = sst [smem:[#allocation21_spill]] %s2060_s3 }
   0x2   :  { %2078 = sst [smem:[#allocation22_spill]] %s2061_s4 }
   0x3   :  { %2079 = sst [smem:[#allocation23_spill]] %s2062_s5 }
   0x4   :  { %2080 = sst [smem:[#allocation24_spill]] %s2064_s7 }
   0x5   :  { %2081 = sst [smem:[#allocation25_spill]] %s2065_s8 }
   0x6   :  { %2082 = sst [smem:[#allocation26_spill]] %s2066_s9 }
   0x7   :  { %2083 = sst [smem:[#allocation27_spill]] %s2067_s10 }
   0x8   :  { %2084 = sst [smem:[#allocation28_spill]] %s2068_s11 }
   0x9   :  { %2085 = sst [smem:[#allocation29_spill]] %s2070_s13 }
   0xa   :  { %18 = vsyncpa [#allocation3], 0 }
   0xb   :  { %20 = vsyncpa [#allocation3 + $0x1], 0 }
   0xc   :  { %21 = vsyncpa [#allocation6], 0 }
   0xd   :  { %22 = vsyncpa [#allocation9], 0 }
   0xe   :  { %23 = vsyncpa [#allocation12], 0 }
   0xf   :  { %24 = vsyncpa [#allocation4], 0 }
  0x10   :  { %26 = vsyncpa [#allocation4 + $0x1], 0  ;;  %s1787_s25 = smov 0   ;;  %s1789_s26 = smov 0  }
  0x11   :  { %s1791_s27 = smov 0   ;;  %s1793_s28 = smov 0  }
  0x12   :  { %s1795_s29 = smov 0   ;;  %s1797_s30 = smov 0  }
  0x13 LB: > { %2086 = sst [smem:[#allocation20_spill]] %s1697_s28  ;;  %s2071_s14 = sadd.s32 4294967295, %s1705_s30   ;;  %s1705_s30 = sphi %s1797_s30, %s32_s30   ;;  %s1701_s29 = sphi %s1795_s29, %s2111_s29   ;;  %s1697_s28 = sphi %s1793_s28, %s2110_s28   ;;  %s1693_s27 = sphi %s1791_s27, %s2109_s27   ;;  %s1689_s26 = sphi %s1789_s26, %s2108_s26   ;;  %s1685_s25 = sphi %s1787_s25, %s2107_s25  }
  0x14   : > { %p1185_p0 = scmp.ge.s32.totalorder %s1705_s30, 1  ;;  %p1821_p1 = scmp.eq.s32.totalorder %s2071_s14, 0 }
  0x15   : > { %p357_p2 = scmp.lt.s32.totalorder %s1705_s30, 3  ;;  %s2088_s4 = sld [smem:[#allocation22_spill]] }
  0x16   : > { %s1707_s20 = smov [#allocation5]   ;;  %p1192_p6 = scmp.ge.s32.totalorder %s1705_s30, 2 }
  0x17   : > { %p1829_p3 = pnand %p1185_p0, %p357_p2  ;;  %s379_s21 = sshll.u32 %s1707_s20, 4  ;;  %s380_s21 = int_to_ptr.vmem [resolvable:$true] %s379_s21 }
  0x18   : > { %s2091_s8 = sld [smem:[#allocation25_spill]]  ;;  %s2075_s17 = smov 128  }
  0x19   : > { %p1302_p4 = pneg %p1829_p3  ;;  %s2076_s14 = smov 8  }
  0x1a   : > { %s1710_s20 = smov [#allocation8]   ;;  %s2092_s10 = sld [smem:[#allocation27_spill]] }
  0x1b   : > { %s377_s18 = sshll.u32 %s2088_s4, 4  ;;  %p1837_p5 = pnand %p1302_p4, %p1821_p1  ;;  %s378_s18 = int_to_ptr.hbm [resolvable:$true] %s377_s18 }
  0x1c   : > { %s412_s4 = sshll.u32 %s1710_s20, 4  ;;  %s2093_s5 = sld [smem:[#allocation23_spill]]  ;;  %s413_s4 = int_to_ptr.vmem [resolvable:$true] %s412_s4 }
  0x1d   : > { %1305 = dma.hbm_to_vmem [thread:$0]  (!%p1837_p5), %s378_s18, 256, %s380_s21, [#allocation6], %s2075_s17, %s2075_s17, %s2076_s14  }
  0x1e   : > { %s410_s16 = sshll.u32 %s2091_s8, 4  ;;  %s1711_s3 = smov [#allocation11]   ;;  %s411_s16 = int_to_ptr.hbm [resolvable:$true] %s410_s16 }
  0x1f   : > { %1311 = dma.hbm_to_vmem [thread:$0]  (!%p1837_p5), %s411_s16, 128, %s413_s4, [#allocation9]  }
  0x20   : > { %s435_s7 = sshll.u32 %s2092_s10, 4  ;;  %s437_s11 = sshll.u32 %s1711_s3, 4  ;;  %s436_s7 = int_to_ptr.hbm [resolvable:$true] %s435_s7  ;;  %s438_s11 = int_to_ptr.vmem [resolvable:$true] %s437_s11 }
  0x21   : > { %1317 = dma.hbm_to_vmem [thread:$0]  (!%p1837_p5), %s436_s7, 256, %s438_s11, [#allocation12], %s2075_s17, %s2075_s17, %s2076_s14  }
  0x22   : > { %s392_s8 = sshll.u32 %s2093_s5, 4  ;;  %s1712_s13 = smov [#allocation7]   ;;  %s393_s8 = int_to_ptr.hbm [resolvable:$true] %s392_s8 }
  0x23   : > { %s394_s28 = sshll.u32 %s1712_s13, 4  ;;  %s2094_s9 = sld [smem:[#allocation26_spill]]  ;;  %s395_s28 = int_to_ptr.vmem [resolvable:$true] %s394_s28 }
  0x24   : > { %1308 = dma.hbm_to_vmem [thread:$0]  (!%p1837_p5), %s393_s8, 128, %s395_s28, [#allocation6]  }
  0x25   : > { %s453_s7 = sshll.u32 %s2069_s12, 4  ;;  %s1713_s11 = smov [#allocation10]   ;;  %s454_s7 = int_to_ptr.hbm [resolvable:$true] %s453_s7 }
  0x26   : > { %s423_s20 = sshll.u32 %s1713_s11, 4  ;;  %s1714_s23 = smov [#allocation13]   ;;  %s424_s20 = int_to_ptr.vmem [resolvable:$true] %s423_s20 }
  0x27   : > { %s455_s8 = sshll.u32 %s1714_s23, 4  ;;  %s1184_s24 = sadd.s32 4294967294, %s1705_s30   ;;  %s456_s8 = int_to_ptr.vmem [resolvable:$true] %s455_s8 }
  0x28   : > { %1320 = dma.hbm_to_vmem [thread:$0]  (!%p1837_p5), %s454_s7, 128, %s456_s8, [#allocation12]  }
  0x29   : > { %s421_s21 = sshll.u32 %s2094_s9, 4  ;;  %s44_s13 = sadd.s32 1, %s1701_s29  ;;  %s422_s21 = int_to_ptr.hbm [resolvable:$true] %s421_s21 }
  0x2a   : > { %1314 = dma.hbm_to_vmem [thread:$0]  (!%p1837_p5), %s422_s21, 256, %s424_s20, [#allocation9], %s2075_s17, %s2075_s17, %s2076_s14  }
  0x2b   : > { %p46_p7 = scmp.ge.s32.totalorder %s44_s13, 2  ;;  %s53_s28 = sadd.s32 1, %s1693_s27 }
  0x2c   : > { %p60_p8 = scmp.ne.s32.totalorder %s1693_s27, %s1689_s26  ;;  %p61_p9 = scmp.eq.s32.totalorder %s1705_s30, 0 }
  0x2d   : > { %s2113_s13 = smov (%p46_p7, %s44_s13), 0  ;;  %p66_p11 = scmp.ne.s32.totalorder %s1689_s26, %s1685_s25 }
  0x2e   : > { %p1886_p10 = por %p61_p9, %p60_p8  ;;  %s48_s22 = ssub.s32 %s1701_s29, %s2113_s13 }
  0x2f   : > { %s2096_s4 = sadd.s32 4294967295, %s1705_s30   ;;  %p51_p13 = scmp.eq.s32.totalorder %s48_s22, 0 }
  0x30   : > { %p344_p12 = scmp.eq.s32.totalorder %s2096_s4, 1  ;;  %p1898_p0 = por %p1821_p1, %p66_p11 }
  0x31   : > { %p350_p4 = scmp.eq.s32.totalorder %s1184_s24, 1  ;;  %p1335_p7 = scmp.lt.s32.totalorder %s1705_s30, 2 }
  0x32   : > { %p1902_p2 = por %p344_p12, %p60_p8  ;;  %s466_s11 = sand.u32 1, %s1693_s27  }
  0x33   : > { %s1907_s16 = scalar_select %p51_p13, %s1693_s27, %s53_s28  }
  0x34   : > { %p1909_p5 = por %p350_p4, %p66_p11  ;;  %s1239_s20 = smul.u32 48, %s1701_s29 }
  0x35   : > { %s1238_s23 = smul.u32 48, %s466_s11  ;;  %p1322_p8 = pnand %p1335_p7, %p1886_p10 }
  0x36   : > { %s476_s4 = scalar_lea.hbm %s2057_s0, %s1239_s20  ;;  %s467_s28 = scalar_lea.sflag [#allocation3], %s466_s11 }
  0x37   : > { %s477_s17 = sshll.u32 %s476_s4, 4  ;;  %s470_s14 = scalar_lea.vmem [#allocation2], %s1238_s23  ;;  %s478_s17 = int_to_ptr.hbm [resolvable:$true] %s477_s17 }
  0x38   : > { %s479_s24 = sshll.u32 %s470_s14, 4  ;;  %s2100_s5 = smov 8   ;;  %s480_s24 = int_to_ptr.vmem [resolvable:$true] %s479_s24 }
  0x39   : > { %s2101_s9 = smov 128   ;;  %491 = sbr.rel (%p1829_p3) target bundleno = 676 (0x2a4), region = 72 }
  0x3a   : > { %1324 = dma.hbm_to_vmem [thread:$0]  (!%p1322_p8), %s478_s17, 768, %s480_s24, %s467_s28, %s2101_s9, %s2101_s9, %s2100_s5  }
  0x3b   : > { %s1927_s10 = sand.u32 (!%p1829_p3), 1, %s1689_s26  }
  0x3c   : > { %s1240_s18 = smul.u32 (!%p1829_p3), 48, %s1927_s10  ;;  %s494_s20 = scalar_lea.sflag (!%p1829_p3), [#allocation3], %s1927_s10 }
  0x3e   : > { %s497_s14 = scalar_lea.vmem [#allocation2], %s1240_s18 }
  0x3f   : > { %1664 = dma.done.wait (%p1898_p0), %s494_s20, 768  }
  0x40   : > { %1666 = vsyncadd (%p1898_p0), %s494_s20, 4294966528 }
  0x41   : > { %1668 = dma.done.wait (%p1821_p1), [#allocation6], 384  }
  0x42   : > { %1670 = vsyncadd (%p1821_p1), [#allocation6], 4294966912 }
  0x43   : > { %1672 = dma.done.wait (%p1821_p1), [#allocation9], 384  }
  0x44   : > { %1674 = vsyncadd (%p1821_p1), [#allocation9], 4294966912 }
  0x45   : > { %1676 = dma.done.wait (%p1821_p1), [#allocation12], 384  }
  0x46   : > { %1678 = vsyncadd (%p1821_p1), [#allocation12], 4294966912  ;;  %v592_v0 = vld [vmem:[%s497_s14 + $0x8] sm:$0xff]  ;;  %v1202_v1 = vld [vmem:[%s497_s14 + $0x18] sm:$0xff]  ;;  %vm637_vm0 = vcmask 130048   ;;  %s2103_s15 = sld [smem:[#allocation21_spill]] }
  0x47   : > { %v1204_v2 = vld [vmem:[%s497_s14 + $0x28] sm:$0xff]  ;;  %v594_v3 = vmul.f32 255.0, %v592_v0  ;;  %v599_v4 = vmul.f32 255.0, %v1202_v1  ;;  %v591_v6 = vld [vmem:[%s497_s14] sm:$0xff]  ;;  %v1201_v7 = vld [vmem:[%s497_s14 + $0x10] sm:$0xff]  ;;  %s2104_s21 = sld [smem:[#allocation24_spill]] }
  0x48   : > { %v604_v5 = vmul.f32 255.0, %v1204_v2  ;;  %v1203_v8 = vld [vmem:[%s497_s14 + $0x20] sm:$0xff]  ;;  %v593_v9 = vmul.f32 255.0, %v591_v6  ;;  %v598_v10 = vmul.f32 255.0, %v1201_v7  ;;  %v574_v21 = vld [vmem:[%s2059_s2 + $0x8] sm:$0xff]  ;;  %s2102_s14 = sld [smem:[#allocation28_spill]] }
  0x49   : > { %v603_v11 = vmul.f32 255.0, %v1203_v8  ;;  %v606_v12 = vmul.f32 0.299, %v594_v3  ;;  %v608_v13 = vmul.f32 0.587, %v599_v4  ;;  %687 = vmatpush.msra.mxu1 %v574_v21  ;;  %1236 = vmatpush.msra.mxu3 %v574_v21  ;;  %v628_v28 = vmul.f32 0.5, %v594_v3 }
  0x4a   : > { %v612_v14 = vmul.f32 0.114, %v604_v5  ;;  %v605_v15 = vmul.f32 0.299, %v593_v9  ;;  %v607_v16 = vmul.f32 0.587, %v598_v10 }
  0x4b   : > { %v611_v17 = vmul.f32 0.114, %v603_v11  ;;  %v610_v18 = vadd.f32 %v608_v13, %v606_v12  ;;  %v618_v19 = vmul.f32 -0.168736, %v594_v3  ;;  %v620_v20 = vmul.f32 0.331264, %v599_v4 }
  0x4c   : > { %v609_v22 = vadd.f32 %v607_v16, %v605_v15  ;;  %v624_v23 = vmul.f32 0.5, %v604_v5  ;;  %v617_v24 = vmul.f32 -0.168736, %v593_v9  ;;  %v619_v25 = vmul.f32 0.331264, %v598_v10  ;;  %v571_v39 = vld [vmem:[%s2058_s1] sm:$0xff] }
  0x4d   : > { %v614_v26 = vadd.f32 %v612_v14, %v610_v18  ;;  %v622_v27 = vsub.f32 %v618_v19, %v620_v20  ;;  %v630_v29 = vmul.f32 0.418688, %v599_v4  ;;  %v627_v31 = vmul.f32 0.5, %v593_v9  ;;  %v572_v40 = vld [vmem:[%s2058_s1 + $0x8] sm:$0xff]  ;;  %v579_v47 = vld [vmem:[#allocation7] sm:$0xff]  ;;  %v573_v48 = vld [vmem:[%s2059_s2] sm:$0xff] }
  0x4e   : > { %v613_v30 = vadd.f32 %v611_v17, %v609_v22  ;;  %v621_v33 = vsub.f32 %v617_v24, %v619_v25  ;;  %v623_v34 = vmul.f32 0.5, %v603_v11  ;;  %v629_v35 = vmul.f32 0.418688, %v598_v10  ;;  %688 = vmatpush.msra.mxu1 %v573_v48  ;;  %1237 = vmatpush.msra.mxu3 %v573_v48  ;;  %v581_v49 = vld [vmem:[%s2063_s6 + $0x8] sm:$0xff]  ;;  %v580_v50 = vld [vmem:[%s2063_s6] sm:$0xff]  ;;  %s2004_s4 = scalar_lea.vmem [#allocation14], %s1240_s18 }
  0x4f   : > { %v1206_v32 = vadd.f32 -128.0, %v614_v26  ;;  %v632_v37 = vsub.f32 %v628_v28, %v630_v29  ;;  %v634_v38 = vmul.f32 0.081312, %v604_v5  ;;  %v626_v41 = vadd.f32 %v624_v23, %v622_v27  ;;  %v585_v55 = vld [vmem:[#allocation10] sm:$0xff]  ;;  %v586_v2 = vld [vmem:[#allocation10 + $0x8] sm:$0xff]  ;;  %s2105_s24 = sld [smem:[#allocation20_spill]] }
  0x50   : > { %v1205_v36 = vadd.f32 -128.0, %v613_v30  ;;  %v631_v42 = vsub.f32 %v627_v31, %v629_v35  ;;  %v633_v43 = vmul.f32 0.081312, %v603_v11  ;;  %v625_v44 = vadd.f32 %v623_v34, %v621_v33  ;;  %808 = vmatpush.msrb.mxu1 %v581_v49  ;;  %v589_v60 = vld [vmem:[%s2102_s14] sm:$0xff]  ;;  %s2106_s14 = sld [smem:[#allocation29_spill]]  ;;  %s1038_s9 = sshll.u32 %s2004_s4, 4  ;;  %s1039_s9 = int_to_ptr.vmem [resolvable:$true] %s1038_s9 }
  0x51   : > { %658 = vmatpush.msra.mxu0 %v1206_v32  ;;  %1234 = vmatpush.msra.mxu2 %v1206_v32  ;;  %v636_v45 = vsub.f32 %v632_v37, %v634_v38  ;;  %vm821_vm5 = vcmask 64512   ;;  %s1025_s17 = scalar_lea.sflag [#allocation4], %s1927_s10 }
  0x52   : > { %v635_v46 = vsub.f32 %v631_v42, %v633_v43  ;;  %809 = vmatpush.msrb.mxu1 %v580_v50 }
  0x53   : > { %659 = vmatpush.msra.mxu0 %v1205_v36  ;;  %1235 = vmatpush.msra.mxu2 %v1205_v36 }
  0x54   : > { %1207 = vmatmul.msk.f32.vlgmr.msra.gmra.mxu0 %vm637_vm0, %v571_v39  ;;  %1208 = vmatmul.msk.f32.vlgmr.msra.gmra.mxu2 %vm637_vm0, %v572_v40  ;;  %v588_v40 = vld [vmem:[#allocation11 + $0x8] sm:$0xff] }
  0x55   : > { %785 = vmatpush.msrb.mxu0 %v626_v41  ;;  %v578_v41 = vld [vmem:[#allocation5 + $0x8] sm:$0xff]  ;;  %s1273_s18 = smul.u32 48, %s2105_s24 }
  0x56   : > { %759 = vmatpush.msrb.mxu3 %v578_v41  ;;  %s1631_s24 = scalar_lea.hbm %s2106_s14, 96 }
  0x57   : > { %786 = vmatpush.msrb.mxu0 %v625_v44  ;;  %s1037_s5 = scalar_lea.hbm %s2106_s14, %s1273_s18 }
  0x58   : > { %s1040_s19 = sshll.u32 %s1037_s5, 4  ;;  %s1041_s19 = int_to_ptr.hbm [resolvable:$true] %s1040_s19 }
  0x59   : > { %894 = vmatpush.msra.mxu0 %v636_v45  ;;  %s1625_s11 = sshra.s32 %s1041_s19, 4  ;;  %s1626_s11 = int_to_ptr.hbm [resolvable:$true] %s1625_s11 }
  0x5a   : > { %s1627_s23 = scalar_lea.hbm %s1626_s11, 48  ;;  %p1632_p10 = scmp.lt.s32.totalorder %s1626_s11, %s2106_s14 }
  0x5b   : > { %895 = vmatpush.msra.mxu0 %v635_v46  ;;  %v587_v46 = vld [vmem:[#allocation11] sm:$0xff]  ;;  %p1628_p1 = scmp.ne.s32.totalorder %s1626_s11, %s1627_s23  ;;  %p1633_p11 = scmp.lt.s32.totalorder %s1631_s24, %s1627_s23 }
  0x5c   : > { %1215 = vmatmul.msk.f32.vlgmr.msrb.gmra.mxu0 %vm637_vm0, %v579_v47 }
  0x5d   : > { %p1629_p3 = pnand %p1628_p1, %p1902_p2  ;;  %p1634_p12 = por %p1633_p11, %p1632_p10 }
  0x5f   : > { %p1630_p9 = pneg %p1629_p3 }
  0x61   : > { %p1635_p13 = pnand %p1634_p12, %p1630_p9 }
  0x64   : > { %1221 = vmatmul.msk.f32.vlgmr.msra.gmra.mxu0 %vm637_vm0, %v579_v47  ;;  %v590_v47 = vld [vmem:[#allocation13] sm:$0xff] }
  0xd1   : > { %v661_v51 = vpop.f32.mrf.mxu0 }
  0xd2   : > { %1209 = vmatmul.msk.f32.vlgmr.msra.gmra.mxu1 %vm637_vm0, %v661_v51  ;;  %v575_v51 = vld [vmem:[%s2103_s15] sm:$0xff] }
  0xd3   : > { %917 = vmatpush.msra.mxu1 %v581_v49 }
  0xd5   : > { %918 = vmatpush.msra.mxu1 %v580_v50 }
  0xd7   : > { %v664_v52 = vpop.f32.mrf.mxu2 }
  0xd8   : > { %1210 = vmatmul.msk.f32.vlgmr.msra.gmra.mxu3 %vm637_vm0, %v664_v52 }
  0xd9   : > { %v788_v53 = vpop.f32.mrf.mxu0 }
  0xda   : > { %1216 = vmatmul.msk.f32.vlgmr.msrb.gmra.mxu1 %vm637_vm0, %v788_v53 }
  0xe1   : > { %v897_v54 = vpop.f32.mrf.mxu0 }
  0xe2   : > { %1222 = vmatmul.msk.f32.vlgmr.msra.gmra.mxu1 %vm637_vm0, %v897_v54 }
 0x14f   : > { %v690_v56 = vpop.f32.mrf.mxu1 }
 0x150   : > { %v696_v57 = vmul.f32 %v690_v56, %v585_v55  ;;  %v582_v55 = vld [vmem:[%s2104_s21] sm:$0xff]  ;;  %v576_v56 = vld [vmem:[%s2103_s15 + $0x8] sm:$0xff] }
 0x152   : > { %v1243_v58 = vcvt.f32.s32 %v696_v57  ;;  %v1246_v62 = vand.u32 2147483648, %v696_v57  ;;  %v1241_v0 = vand.u32 2147483647, %v696_v57 }
 0x154   : > { %v1244_v59 = vcvt.s32.f32 %v1243_v58  ;;  %vm1242_vm1 = vcmp.lt.f32.partialorder %v1241_v0, 8388608.0  ;;  %v577_v58 = vld [vmem:[#allocation5] sm:$0xff] }
 0x155   : > { %760 = vmatpush.msrb.mxu3 %v577_v58 }
 0x156   : > { %v1245_v61 = vand.u32 2147483647, %v1244_v59  ;;  %v584_v59 = vld [vmem:[#allocation8] sm:$0xff] }
 0x157   : > { %v811_v63 = vpop.f32.mrf.mxu1  ;;  %872 = vmatpush.msra.mxu3 %v584_v59  ;;  %974 = vmatpush.msrb.mxu1 %v584_v59 }
 0x158   : > { %v814_v1 = vmul.f32 %v811_v63, %v589_v60  ;;  %v1247_v4 = vor.u32 %v1246_v62, %v1245_v61 }
 0x15a   : > { %v1259_v3 = vcvt.f32.s32 %v814_v1  ;;  %v1257_v6 = vand.u32 2147483647, %v814_v1  ;;  %v1262_v8 = vand.u32 2147483648, %v814_v1  ;;  %v1248_v12 = vsel %vm1242_vm1, %v1247_v4, %v696_v57 }
 0x15b   : > { %v693_v5 = vpop.f32.mrf.mxu3  ;;  %v700_v18 = vsub.f32 %v696_v57, %v1248_v12  ;;  %v583_v57 = vld [vmem:[%s2104_s21 + $0x8] sm:$0xff] }
 0x15c   : > { %v1260_v7 = vcvt.s32.f32 %v1259_v3  ;;  %v697_v9 = vmul.f32 %v693_v5, %v586_v2  ;;  %vm1258_vm2 = vcmp.lt.f32.partialorder %v1257_v6, 8388608.0 }
 0x15d   : > { %v702_v28 = vmul.f32 %v700_v18, %v700_v18 }
 0x15e   : > { %v1261_v10 = vand.u32 2147483647, %v1260_v7  ;;  %v1251_v11 = vcvt.f32.s32 %v697_v9  ;;  %v1249_v17 = vand.u32 2147483647, %v697_v9  ;;  %v1254_v21 = vand.u32 2147483648, %v697_v9 }
 0x15f   : > { %v920_v13 = vpop.f32.mrf.mxu1  ;;  %v704_v35 = vmul.f32 %v702_v28, %v700_v18 }
 0x160   : > { %v923_v14 = vmul.f32 %v920_v13, %v589_v60  ;;  %v1252_v15 = vcvt.s32.f32 %v1251_v11  ;;  %v1263_v16 = vor.u32 %v1262_v8, %v1261_v10  ;;  %vm1250_vm3 = vcmp.lt.f32.partialorder %v1249_v17, 8388608.0 }
 0x161   : > { %v706_v43 = vadd.f32 %v1248_v12, %v704_v35 }
 0x162   : > { %v1267_v19 = vcvt.f32.s32 %v923_v14  ;;  %v1253_v20 = vand.u32 2147483647, %v1252_v15  ;;  %v1265_v22 = vand.u32 2147483647, %v923_v14  ;;  %v1264_v23 = vsel %vm1258_vm2, %v1263_v16, %v814_v1 }
 0x163   : > { %v1270_v25 = vand.u32 2147483648, %v923_v14  ;;  %v816_v27 = vsub.f32 %v814_v1, %v1264_v23  ;;  %v708_v50 = vmul.f32 %v706_v43, %v587_v46 }
 0x164   : > { %v1268_v24 = vcvt.s32.f32 %v1267_v19  ;;  %v1255_v26 = vor.u32 %v1254_v21, %v1253_v20  ;;  %vm1266_vm4 = vcmp.lt.f32.partialorder %v1265_v22, 8388608.0 }
 0x165   : > { %v817_v31 = vmul.f32 %v816_v27, %v816_v27 }
 0x166   : > { %v1269_v29 = vand.u32 2147483647, %v1268_v24  ;;  %v1256_v30 = vsel %vm1250_vm3, %v1255_v26, %v697_v9 }
 0x167   : > { %v701_v32 = vsub.f32 %v697_v9, %v1256_v30  ;;  %v818_v36 = vmul.f32 %v817_v31, %v816_v27 }
 0x168   : > { %v1271_v33 = vor.u32 %v1270_v25, %v1269_v29 }
 0x169   : > { %v703_v34 = vmul.f32 %v701_v32, %v701_v32  ;;  %v819_v44 = vadd.f32 %v1264_v23, %v818_v36 }
 0x16a   : > { %v1272_v37 = vsel %vm1266_vm4, %v1271_v33, %v923_v14 }
 0x16b   : > { %v705_v38 = vmul.f32 %v703_v34, %v701_v32  ;;  %v925_v39 = vsub.f32 %v923_v14, %v1272_v37  ;;  %v820_v52 = vmul.f32 %v819_v44, %v590_v47 }
 0x16d   : > { %v707_v42 = vadd.f32 %v1256_v30, %v705_v38  ;;  %v926_v45 = vmul.f32 %v925_v39, %v925_v39 }
 0x16f   : > { %v709_v48 = vmul.f32 %v707_v42, %v588_v40  ;;  %v927_v49 = vmul.f32 %v926_v45, %v925_v39 }
 0x171   : > { %730 = vmatpush.msrb.mxu2 %v709_v48  ;;  %v928_v53 = vadd.f32 %v1272_v37, %v927_v49 }
 0x173   : > { %731 = vmatpush.msrb.mxu2 %v708_v50  ;;  %v929_v54 = vmul.f32 %v928_v53, %v590_v47 }
 0x174   : > { %1211 = vmatmul.msk.f32.vlgmr.msrb.gmra.mxu2 %vm637_vm0, %v575_v51 }
 0x175   : > { %843 = vmatpush.msra.mxu2 %v820_v52  ;;  %945 = vmatpush.msrb.mxu0 %v929_v54 }
 0x176   : > { %1223 = vmatmul.msk.f32.vlgmr.msrb.gmra.mxu0 %vm821_vm5, %v582_v55 }
 0x17c   : > { %1212 = vmatmul.msk.f32.gmra.mxu2 %vm637_vm0, %v576_v56 }
 0x17e   : > { %1224 = vmatmul.msk.f32.gmra.mxu0 %vm821_vm5, %v583_v57 }
 0x184   : > { %1217 = vmatmul.msk.f32.vlgmr.msra.gmra.mxu2 %vm821_vm5, %v582_v55 }
 0x18c   : > { %1218 = vmatmul.msk.f32.gmra.mxu2 %vm821_vm5, %v583_v57 }
 0x1f3   : > { %v947_v60 = vpop.f32.mrf.mxu0 }
 0x1f4   : > { %1225 = vmatmul.msk.f32.vlgmr.msrb.gmra.mxu1 %vm821_vm5, %v947_v60 }
 0x1f7   : > { %v733_v61 = vpop.f32.mrf.mxu2 }
 0x1f8   : > { %1213 = vmatmul.msk.f32.vlgmr.msrb.gmra.mxu3 %vm637_vm0, %v733_v61 }
 0x1fb   : > { %v950_v62 = vpop.f32.mrf.mxu0 }
 0x1fc   : > { %1226 = vmatmul.msk.f32.gmra.mxu1 %vm821_vm5, %v950_v62 }
 0x1ff   : > { %v736_v63 = vpop.f32.mrf.mxu2 }
 0x200   : > { %1214 = vmatmul.msk.f32.gmra.mxu3 %vm637_vm0, %v736_v63 }
 0x207   : > { %v845_v0 = vpop.f32.mrf.mxu2 }
 0x208   : > { %1219 = vmatmul.msk.f32.vlgmr.msra.gmra.mxu3 %vm821_vm5, %v845_v0 }
 0x20f   : > { %v848_v1 = vpop.f32.mrf.mxu2 }
 0x210   : > { %1220 = vmatmul.msk.f32.gmra.mxu3 %vm821_vm5, %v848_v1 }
 0x271   : > { %v976_v2 = vpop.f32.mrf.mxu1 }
 0x272   : > { %v982_v3 = vmul.f32 1.402, %v976_v2  ;;  %v990_v17 = vmul.f32 0.714136, %v976_v2 }
 0x279   : > { %v979_v7 = vpop.f32.mrf.mxu1 }
 0x27a   : > { %v983_v10 = vmul.f32 1.402, %v979_v7  ;;  %v991_v28 = vmul.f32 0.714136, %v979_v7 }
 0x27b   : > { %v762_v4 = vpop.f32.mrf.mxu3 }
 0x27c   : > { %v763_v5 = vadd.f32 128.0, %v762_v4 }
 0x27e   : > { %v984_v6 = vadd.f32 %v982_v3, %v763_v5 }
 0x280   : > { %v998_v8 = vmax.f32 %v984_v6, 0.0 }
 0x282   : > { %v1000_v9 = vmin.f32 %v998_v8, 255.0 }
 0x283   : > { %v765_v11 = vpop.f32.mrf.mxu3 }
 0x284   : > { %v1002_v12 = vmul.f32 0.003921569, %v1000_v9  ;;  %v766_v13 = vadd.f32 128.0, %v765_v11 }
 0x286   : > { %1004 = vst.msk [vmem:[%s2004_s4] sm:$0xff] %vm637_vm0, %v1002_v12  ;;  %v985_v14 = vadd.f32 %v983_v10, %v766_v13 }
 0x288   : > { %v999_v15 = vmax.f32 %v985_v14, 0.0 }
 0x28a   : > { %v1001_v16 = vmin.f32 %v999_v15, 255.0 }
 0x28b   : > { %v874_v18 = vpop.f32.mrf.mxu3 }
 0x28c   : > { %v1003_v19 = vmul.f32 0.003921569, %v1001_v16  ;;  %v986_v20 = vmul.f32 0.344136, %v874_v18  ;;  %v994_v21 = vmul.f32 1.772, %v874_v18 }
 0x28e   : > { %1005 = vst.msk [vmem:[%s2004_s4 + $0x8] sm:$0xff] %vm637_vm0, %v1003_v19  ;;  %v988_v22 = vsub.f32 %v763_v5, %v986_v20  ;;  %v996_v23 = vadd.f32 %v994_v21, %v763_v5 }
 0x290   : > { %v992_v24 = vsub.f32 %v988_v22, %v990_v17  ;;  %v1015_v25 = vmax.f32 %v996_v23, 0.0 }
 0x292   : > { %v1006_v26 = vmax.f32 %v992_v24, 0.0  ;;  %v1017_v27 = vmin.f32 %v1015_v25, 255.0 }
 0x293   : > { %v877_v29 = vpop.f32.mrf.mxu3 }
 0x294   : > { %v1008_v30 = vmin.f32 %v1006_v26, 255.0  ;;  %v1019_v31 = vmul.f32 0.003921569, %v1017_v27  ;;  %v987_v32 = vmul.f32 0.344136, %v877_v29 }
 0x295   : > { %v995_v33 = vmul.f32 1.772, %v877_v29 }
 0x296   : > { %v1010_v34 = vmul.f32 0.003921569, %v1008_v30  ;;  %1229 = vst.msk [vmem:[%s2004_s4 + $0x20] sm:$0xff] %vm637_vm0, %v1019_v31  ;;  %v989_v35 = vsub.f32 %v766_v13, %v987_v32 }
 0x297   : > { %v997_v36 = vadd.f32 %v995_v33, %v766_v13 }
 0x298   : > { %1227 = vst.msk [vmem:[%s2004_s4 + $0x10] sm:$0xff] %vm637_vm0, %v1010_v34  ;;  %v993_v37 = vsub.f32 %v989_v35, %v991_v28 }
 0x299   : > { %v1016_v38 = vmax.f32 %v997_v36, 0.0 }
 0x29a   : > { %v1007_v39 = vmax.f32 %v993_v37, 0.0 }
 0x29b   : > { %v1018_v40 = vmin.f32 %v1016_v38, 255.0 }
 0x29c   : > { %v1009_v41 = vmin.f32 %v1007_v39, 255.0 }
 0x29d   : > { %v1020_v42 = vmul.f32 0.003921569, %v1018_v40 }
 0x29e   : > { %v1011_v43 = vmul.f32 0.003921569, %v1009_v41 }
 0x29f   : > { %1230 = vst.msk [vmem:[%s2004_s4 + $0x28] sm:$0xff] %vm637_vm0, %v1020_v42 }
 0x2a0   : > { %1228 = vst.msk [vmem:[%s2004_s4 + $0x18] sm:$0xff] %vm637_vm0, %v1011_v43 }
 0x2a1   : > { %1638 = shalt.err (!%p1635_p13)
}
 0x2a2   : > { %s1715_s10 = smov 128   ;;  %s1716_s4 = smov 8  }
 0x2a3   : > { %1300 = dma.vmem_to_hbm [thread:$0]  (%p1902_p2), %s1039_s9, 768, %s1041_s19, %s1025_s17, %s1715_s10, %s1715_s10, %s1716_s4  }
 0x2a4 PF: > { %s1055_s20 = sand.u32 1, %s1685_s25   ;;  %p1326_p0 = pnand %p1192_p6, %p1909_p5 }
 0x2a5   : > { %s1056_s5 = scalar_lea.sflag [#allocation4], %s1055_s20 }
 0x2a6   : > { %p1327_p4 = pneg %p1326_p0 }
 0x2a8   : > { %1680 = dma.done.wait (%p1327_p4), %s1056_s5, 768  }
 0x2a9   : > { %1682 = vsyncadd (%p1327_p4), %s1056_s5, 4294966528  ;;  %s32_s30 = sadd.s32 1, %s1705_s30   ;;  %s2107_s25 = smov %s1689_s26 }
 0x2aa   : > { %p29_p7 = scmp.ge.s32.totalorder %s32_s30, 4   ;;  %s2108_s26 = smov %s1693_s27 }
 0x2ab   : > { %s2109_s27 = smov %s1907_s16  ;;  %s2110_s28 = smov %s1701_s29 }
 0x2ac   : > { %s2111_s29 = smov %s2113_s13  ;;  %31 = sbr.rel (!%p29_p7) target bundleno = 19 (0x13), region = 145 }
 0x2b1   :  { %1062 = vsyncpa [#allocation3], 1 }
 0x2b2   :  { %1064 = vsyncpa [#allocation3 + $0x1], 1 }
 0x2b3   :  { %1065 = vsyncpa [#allocation6], 1 }
 0x2b4   :  { %1066 = vsyncpa [#allocation9], 1 }
 0x2b5   :  { %1067 = vsyncpa [#allocation12], 1 }
 0x2b6   :  { %1068 = vsyncpa [#allocation4], 1 }
 0x2b7   :  { %1070 = vsyncpa [#allocation4 + $0x1], 1 }

</bundles_post_ra>
